<compile_context>
chip_gen: v5e
topology: v5e:2x2
jax: 0.10.0
libtpu: 0.0.40
codegen_flags: <defaults>
</compile_context>

<pallas_src>
import functools

import jax
import jax.numpy as jnp
from jax.experimental import pallas as pl
from jax.experimental.pallas import tpu as pltpu

W_LIST = [11, 11, 11, 11, 11, 11, 11, 11, 21, 21, 21, 21, 21, 21, 21, 21]
AR_LIST = [1, 1, 1, 1, 4, 4, 4, 4, 10, 10, 10, 10, 20, 20, 20, 20]

_PW_TILE_R = 512          # row tile for the pointwise (1x1) kernel
_CHUNK_T = 512            # time chunk for the im2col slab inside the resblock kernel
_VMEM_LIMIT = 32 * 1024 * 1024


def _round_up(x, m):
    return (x + m - 1) // m * m


# ----------------------------------------------------------------------------
# Kernel 1: pointwise (1x1) conv: y = x @ W + b (+ acc), optional fused sigmoid
# ----------------------------------------------------------------------------
def _make_pointwise_kernel(has_acc, act):
    def kernel(*refs):
        if has_acc:
            x_ref, w_ref, b_ref, acc_ref, o_ref = refs
        else:
            x_ref, w_ref, b_ref, o_ref = refs
        z = jnp.dot(x_ref[...].astype(jnp.bfloat16), w_ref[...],
                    preferred_element_type=jnp.float32) + b_ref[...]
        if has_acc:
            z = z + acc_ref[...]
        if act == "sigmoid":
            z = 1.0 / (1.0 + jnp.exp(-z))
        o_ref[...] = z
    return kernel


@functools.lru_cache(maxsize=None)
def _build_pointwise(rows, cin, cout, has_acc, act):
    tile_r = rows if rows <= _PW_TILE_R else _PW_TILE_R   # full rows or multiple of 8
    grid = (pl.cdiv(rows, tile_r),)
    in_specs = [
        pl.BlockSpec((tile_r, cin), lambda i: (i, 0)),     # activations (f32)
        pl.BlockSpec((cin, cout), lambda i: (0, 0)),       # weight (bf16)
        pl.BlockSpec((1, cout), lambda i: (0, 0)),         # bias (f32)
    ]
    if has_acc:
        in_specs.append(pl.BlockSpec((tile_r, cout), lambda i: (i, 0)))
    call = pl.pallas_call(
        _make_pointwise_kernel(has_acc, act),
        grid=grid,
        in_specs=in_specs,
        out_specs=pl.BlockSpec((tile_r, cout), lambda i: (i, 0)),
        out_shape=jax.ShapeDtypeStruct((rows, cout), jnp.float32),
        input_output_aliases={3: 0} if has_acc else {},
        compiler_params=pltpu.CompilerParams(
            dimension_semantics=("parallel",),
            vmem_limit_bytes=_VMEM_LIMIT),
    )
    return jax.jit(call)


def pointwise_conv(x, w, b, acc=None, act=None):
    """x: (N, T, Cin) f32; w: (Cin, Cout) f32; b: (Cout,); acc: optional (N, T, Cout)."""
    n, t, cin = x.shape
    cout = w.shape[1]
    rows = n * t
    fn = _build_pointwise(rows, cin, cout, acc is not None, act)
    args = [x.reshape(rows, cin), w.astype(jnp.bfloat16), b.reshape(1, cout)]
    if acc is not None:
        args.append(acc.reshape(rows, cout))
    return fn(*args).reshape(n, t, cout)


# ----------------------------------------------------------------------------
# Kernel 2: fused ResBlock
#   out = conv2(relu(bn2(conv1(relu(bn1(x)))))) + x      (both convs dilated, 'same')
# ----------------------------------------------------------------------------
def _make_resblock_kernel(wk, ar, pad, lead, s_len, t, c, chunk):
    def kernel(x_ref, ss_ref, w1_ref, b1_ref, w2_ref, b2_ref, o_ref, p1, p2, col):
        # Zero only the halo rows of the padded scratches; the center rows are fully
        # rewritten every step.  Done each step so splitting the grid across
        # TensorCores stays correct.
        zlead = jnp.zeros((lead, c), jnp.float32)
        p1[0:lead, :] = zlead
        p2[0:lead, :] = zlead
        tail = s_len - (lead + t)
        ztail = jnp.zeros((tail, c), jnp.float32)
        p1[lead + t:s_len, :] = ztail
        p2[lead + t:s_len, :] = ztail

        s1 = ss_ref[0:1, :]
        sh1 = ss_ref[1:2, :]
        s2 = ss_ref[2:3, :]
        sh2 = ss_ref[3:4, :]

        # BN1 + ReLU into padded scratch p1 (chunked to bound live vregs).
        for cs in range(0, t, chunk):
            csz = min(chunk, t - cs)
            xs = x_ref[0, cs:cs + csz, :]
            p1[lead + cs:lead + cs + csz, :] = jnp.maximum(xs * s1 + sh1, 0.0)

        base = lead - pad   # scratch index of padded-coordinate 0

        # conv1 as one big-K matmul per chunk, then BN2 + ReLU into p2.
        for cs in range(0, t, chunk):
            csz = min(chunk, t - cs)
            for w in range(wk):
                rs = base + cs + w * ar
                col[0:csz, w * c:(w + 1) * c] = p1[rs:rs + csz, :]
            h = jnp.dot(col[0:csz, :].astype(jnp.bfloat16), w1_ref[...],
                        preferred_element_type=jnp.float32) + b1_ref[...]
            p2[lead + cs:lead + cs + csz, :] = jnp.maximum(h * s2 + sh2, 0.0)

        # conv2 as one big-K matmul per chunk, + bias + residual -> output.
        for cs in range(0, t, chunk):
            csz = min(chunk, t - cs)
            for w in range(wk):
                rs = base + cs + w * ar
                col[0:csz, w * c:(w + 1) * c] = p2[rs:rs + csz, :]
            y = jnp.dot(col[0:csz, :].astype(jnp.bfloat16), w2_ref[...],
                        preferred_element_type=jnp.float32) + b2_ref[...]
            o_ref[0, cs:cs + csz, :] = y + x_ref[0, cs:cs + csz, :]

    return kernel


@functools.lru_cache(maxsize=None)
def _build_resblock(n, t, c, wk, ar):
    pad = ar * (wk - 1) // 2            # PyTorch 'same' padding
    lead = _round_up(pad, 8)            # sublane-aligned center start
    s_len = _round_up(lead + t + pad, 8)
    chunk = min(_CHUNK_T, t)
    kernel = _make_resblock_kernel(wk, ar, pad, lead, s_len, t, c, chunk)
    call = pl.pallas_call(
        kernel,
        grid=(n,),
        in_specs=[
            pl.BlockSpec((1, t, c), lambda i: (i, 0, 0)),      # x (one sample / step)
            pl.BlockSpec((4, c), lambda i: (0, 0)),            # [s1; sh1; s2; sh2]
            pl.BlockSpec((wk * c, c), lambda i: (0, 0)),       # conv1 weight (bf16)
            pl.BlockSpec((1, c), lambda i: (0, 0)),            # conv1 bias
            pl.BlockSpec((wk * c, c), lambda i: (0, 0)),       # conv2 weight (bf16)
            pl.BlockSpec((1, c), lambda i: (0, 0)),            # conv2 bias
        ],
        out_specs=pl.BlockSpec((1, t, c), lambda i: (i, 0, 0)),
        out_shape=jax.ShapeDtypeStruct((n, t, c), jnp.float32),
        scratch_shapes=[
            pltpu.VMEM((s_len, c), jnp.float32),               # padded relu(bn1(x))
            pltpu.VMEM((s_len, c), jnp.float32),               # padded relu(bn2(h))
            pltpu.VMEM((chunk, wk * c), jnp.float32),          # im2col slab
        ],
        compiler_params=pltpu.CompilerParams(
            dimension_semantics=("parallel",),
            vmem_limit_bytes=_VMEM_LIMIT),
    )
    return jax.jit(call)


def resblock_fused(x, blk, ar):
    """x: (N, T, C) f32; blk: dict of folded-BN params + conv weights/biases."""
    n, t, c = x.shape
    wk = blk["conv1_w"].shape[0]
    fn = _build_resblock(n, t, c, wk, int(ar))
    ss = jnp.stack([blk["bn1_scale"], blk["bn1_shift"],
                    blk["bn2_scale"], blk["bn2_shift"]], axis=0)
    w1 = blk["conv1_w"].reshape(wk * c, c).astype(jnp.bfloat16)
    w2 = blk["conv2_w"].reshape(wk * c, c).astype(jnp.bfloat16)
    return fn(x, ss, w1, blk["conv1_b"].reshape(1, c),
              w2, blk["conv2_b"].reshape(1, c))


# ----------------------------------------------------------------------------
# Shared trunk (conv1 -> skip -> 16 resblocks with 4 dense/skip updates)
# ----------------------------------------------------------------------------
def _trunk(params, x_nct, pw, rb):
    x = jnp.transpose(x_nct[:, 0:4, :], (0, 2, 1)).astype(jnp.float32)   # (N, T, 4)
    conv = pw(x, params["conv1_w"], params["conv1_b"])
    skip = pw(conv, params["skip_w"], params["skip_b"])
    j = 0
    for i in range(len(W_LIST)):
        conv = rb(conv, params["resblocks"][i], AR_LIST[i])
        if (i + 1) % 4 == 0 or i + 1 == len(W_LIST):
            skip = pw(conv, params["convs"][j]["w"], params["convs"][j]["b"], acc=skip)
            j += 1
    return skip


def _fused_head_weights(params):
    # softmax over 2 channels == [sigmoid(a-b), sigmoid(b-a)]  ->  every one of the
    # 12 head channels becomes a plain sigmoid after a weight-difference transform,
    # so all 8 conv_last heads collapse into one pointwise conv with fused sigmoid.
    cols, biases = [], []
    for k in range(4):
        w2, b2 = params["heads"][2 * k]["w"], params["heads"][2 * k]["b"]
        w1, b1 = params["heads"][2 * k + 1]["w"], params["heads"][2 * k + 1]["b"]
        cols.append(jnp.stack([w2[:, 0] - w2[:, 1], w2[:, 1] - w2[:, 0]], axis=1))
        biases.append(jnp.stack([b2[0] - b2[1], b2[1] - b2[0]]))
        cols.append(w1)
        biases.append(b1)
    return jnp.concatenate(cols, axis=1), jnp.concatenate(biases, axis=0)


@functools.partial(jax.jit, static_argnums=(2,))
def sp_encoder_forward(params, x_nct, context_len):
    skip = _trunk(params, x_nct, pointwise_conv, resblock_fused)
    t = skip.shape[1]
    skip = skip[:, context_len:t - context_len, :]          # F.pad(skip, (-ctx, -ctx))
    w_head, b_head = _fused_head_weights(params)
    out = pointwise_conv(skip, w_head, b_head, act="sigmoid")    # (N, T', 12)
    return jnp.transpose(out, (0, 2, 1))                         # (N, 12, T')


# ----------------------------------------------------------------------------
# Pure-JAX reference (same math & bf16 cast points, heads via explicit softmax/sigmoid)
# ----------------------------------------------------------------------------
def _ref_pointwise(x, w, b, acc=None, act=None):
    z = jnp.einsum("ntc,cd->ntd", x.astype(jnp.bfloat16), w.astype(jnp.bfloat16),
                   preferred_element_type=jnp.float32) + b[None, None, :]
    if acc is not None:
        z = z + acc
    if act == "sigmoid":
        z = jax.nn.sigmoid(z)
    return z


def _ref_dconv(a, w, b, ar, pad):
    n, t, c = a.shape
    wk = w.shape[0]
    ap = jnp.pad(a, ((0, 0), (pad, pad), (0, 0))).astype(jnp.bfloat16)
    wb = w.astype(jnp.bfloat16)
    out = jnp.zeros((n, t, c), jnp.float32) + b[None, None, :]
    for wi in range(wk):
        out = out + jnp.einsum("ntc,cd->ntd", ap[:, wi * ar:wi * ar + t, :], wb[wi],
                               preferred_element_type=jnp.float32)
    return out


def _ref_resblock(x, blk, ar):
    wk = blk["conv1_w"].shape[0]
    pad = int(ar) * (wk - 1) // 2
    a1 = jnp.maximum(x * blk["bn1_scale"] + blk["bn1_shift"], 0.0)
    h = _ref_dconv(a1, blk["conv1_w"], blk["conv1_b"], int(ar), pad)
    a2 = jnp.maximum(h * blk["bn2_scale"] + blk["bn2_shift"], 0.0)
    return _ref_dconv(a2, blk["conv2_w"], blk["conv2_b"], int(ar), pad) + x


@functools.partial(jax.jit, static_argnums=(2,))
def sp_encoder_reference(params, x_nct, context_len):
    skip = _trunk(params, x_nct, _ref_pointwise, _ref_resblock)
    t = skip.shape[1]
    skip = skip[:, context_len:t - context_len, :]
    outs = []
    for k in range(4):
        pair = params["heads"][2 * k]
        single = params["heads"][2 * k + 1]
        outs.append(jax.nn.softmax(_ref_pointwise(skip, pair["w"], pair["b"]), axis=-1))
        outs.append(jax.nn.sigmoid(_ref_pointwise(skip, single["w"], single["b"])))
    return jnp.transpose(jnp.concatenate(outs, axis=-1), (0, 2, 1))


# ----------------------------------------------------------------------------
# Deterministic synthetic parameters matching SpEncoder_4tis module shapes
# ----------------------------------------------------------------------------
def init_params(key, L):
    keys = iter(jax.random.split(key, 512))

    def nrm(shape, std):
        return std * jax.random.normal(next(keys), shape, jnp.float32)

    def bn_fold():
        gamma = 1.0 + 0.05 * jax.random.normal(next(keys), (L,), jnp.float32)
        beta = 0.05 * jax.random.normal(next(keys), (L,), jnp.float32)
        mean = 0.05 * jax.random.normal(next(keys), (L,), jnp.float32)
        var = 1.0 + 0.05 * jnp.abs(jax.random.normal(next(keys), (L,), jnp.float32))
        scale = gamma * jax.lax.rsqrt(var + 1e-5)
        shift = beta - mean * scale
        return scale, shift

    params = {
        "conv1_w": nrm((4, L), 0.3), "conv1_b": nrm((L,), 0.05),
        "skip_w": nrm((L, L), 0.1), "skip_b": nrm((L,), 0.05),
        "resblocks": [], "convs": [], "heads": [],
    }
    for i in range(len(W_LIST)):
        wk = W_LIST[i]
        s1, sh1 = bn_fold()
        s2, sh2 = bn_fold()
        params["resblocks"].append({
            "bn1_scale": s1, "bn1_shift": sh1,
            "conv1_w": nrm((wk, L, L), 0.02), "conv1_b": nrm((L,), 0.02),
            "bn2_scale": s2, "bn2_shift": sh2,
            "conv2_w": nrm((wk, L, L), 0.02), "conv2_b": nrm((L,), 0.02),
        })
    for _ in range(4):
        params["convs"].append({"w": nrm((L, L), 0.05), "b": nrm((L,), 0.02)})
    for _ in range(4):   # conv_last(2k+1): 2 channels (softmax), conv_last(2k+2): 1 channel (sigmoid)
        params["heads"].append({"w": nrm((L, 2), 0.1), "b": nrm((2,), 0.05)})
        params["heads"].append({"w": nrm((L, 1), 0.1), "b": nrm((1,), 0.05)})
    return params


if __name__ == "__main__":
    L = 32                    # n_chans
    N, C_in, T = 2, 6, 64     # input has >=4 channels; forward keeps the first 4
    context_len = 8           # small stand-in for the default 4000

    key = jax.random.PRNGKey(0)
    kp, kx = jax.random.split(key)
    params = init_params(kp, L)
    x = jax.random.normal(kx, (N, C_in, T), jnp.float32)

    out = jax.block_until_ready(sp_encoder_forward(params, x, context_len))
    assert out.shape == (N, 12, T - 2 * context_len), out.shape

    # softmax pairs (channels 3k, 3k+1) must sum to 1
    for k in range(4):
        psum = out[:, 3 * k, :] + out[:, 3 * k + 1, :]
        assert jnp.allclose(psum, 1.0, atol=1e-3), float(jnp.max(jnp.abs(psum - 1.0)))

    ref = jax.block_until_ready(sp_encoder_reference(params, x, context_len))
    err = float(jnp.max(jnp.abs(out - ref)))
    assert jnp.allclose(out, ref, rtol=1e-2, atol=1e-2), err

    print("KERNEL_OK")
</pallas_src>

<mosaic_0001>
module attributes {stable_mosaic.version = 11 : i64} {
  func.func @kernel(%arg0: i32, %arg1: memref<128x4xf32, #tpu.memory_space<vmem>>, %arg2: memref<4x32xbf16, #tpu.memory_space<vmem>>, %arg3: memref<1x32xf32, #tpu.memory_space<vmem>>, %arg4: memref<128x32xf32, #tpu.memory_space<vmem>>) attributes {dimension_semantics = [#tpu.dimension_semantics<parallel>], iteration_bounds = array<i64: 1>, scalar_prefetch = 0 : i64, scratch_operands = 0 : i64, tpu.core_type = #tpu.core_type<tc>, window_params = [{transform_indices = @transform_0, window_bounds = array<i64: 128, 4>}, {pipeline_mode = #tpu.pipeline_mode<synchronous>, transform_indices = @transform_1, window_bounds = array<i64: 4, 32>}, {pipeline_mode = #tpu.pipeline_mode<synchronous>, transform_indices = @transform_2, window_bounds = array<i64: 1, 32>}, {transform_indices = @transform_3, window_bounds = array<i64: 128, 32>}]} {
    %c0 = arith.constant 0 : index
    %c0_0 = arith.constant 0 : index
    %0 = vector.load %arg1[%c0, %c0_0] : memref<128x4xf32, #tpu.memory_space<vmem>>, vector<128x4xf32>
    %1 = arith.truncf %0 : vector<128x4xf32> to vector<128x4xbf16>
    %c0_1 = arith.constant 0 : index
    %c0_2 = arith.constant 0 : index
    %2 = vector.load %arg2[%c0_1, %c0_2] : memref<4x32xbf16, #tpu.memory_space<vmem>>, vector<4x32xbf16>
    %cst = arith.constant dense<0.000000e+00> : vector<128x32xf32>
    %3 = tpu.matmul %1, %2, %cst {dimension_numbers = #tpu.dot_dimension_numbers<[1], [0], [0], [1], [0, 0, 1, 1], [], []>} : vector<128x4xbf16>, vector<4x32xbf16>, vector<128x32xf32> -> vector<128x32xf32>
    %c0_3 = arith.constant 0 : index
    %c0_4 = arith.constant 0 : index
    %4 = vector.load %arg3[%c0_3, %c0_4] : memref<1x32xf32, #tpu.memory_space<vmem>>, vector<1x32xf32>
    %5 = vector.broadcast %4 : vector<1x32xf32> to vector<128x32xf32>
    %6 = arith.addf %3, %5 : vector<128x32xf32>
    %c0_5 = arith.constant 0 : index
    %c0_6 = arith.constant 0 : index
    %7 = vector.load %arg4[%c0_5, %c0_6] : memref<128x32xf32, #tpu.memory_space<vmem>>, vector<128x32xf32>
    tpu.vector_store %arg4[%c0_5, %c0_6], %6 {strides = array<i32>} : memref<128x32xf32, #tpu.memory_space<vmem>>, vector<128x32xf32>,
    return
  }
  func.func @transform_0(%arg0: i32) -> (i32, i32) {
    %c0_i32 = arith.constant 0 : i32
    %c0_i32_0 = arith.constant 0 : i32
    return %arg0, %c0_i32 : i32, i32
  }
  func.func @transform_1(%arg0: i32) -> (i32, i32) {
    %c0_i32 = arith.constant 0 : i32
    %c0_i32_0 = arith.constant 0 : i32
    %c0_i32_1 = arith.constant 0 : i32
    return %c0_i32, %c0_i32_0 : i32, i32
  }
  func.func @transform_2(%arg0: i32) -> (i32, i32) {
    %c0_i32 = arith.constant 0 : i32
    %c0_i32_0 = arith.constant 0 : i32
    %c0_i32_1 = arith.constant 0 : i32
    return %c0_i32, %c0_i32_0 : i32, i32
  }
  func.func @transform_3(%arg0: i32) -> (i32, i32) {
    %c0_i32 = arith.constant 0 : i32
    %c0_i32_0 = arith.constant 0 : i32
    return %arg0, %c0_i32 : i32, i32
  }
}

</mosaic_0001>

<bundles_post_ra>
// kernel: tpu_custom_call.1
= control target key start
LH: loop header
LB: loop body
LE: loop exit
PB: predicated region body
PF: predicated region fallthrough
CT: control target
= control target key end

     0   :  { %vm69_vm0 = vcmask 1041408   ;;  %vm44_vm1 = vcmask 31744   ;;  %vm122_vm2 = vcmask 261120   ;;  %s301_s1 = inlined_call_operand.vmem [shape: bf16[4,32], index: 1, kind: input, shape index: {}]   ;;  %s302_s0 = inlined_call_operand.vmem [shape: f32[128,4], index: 0, kind: input, shape index: {}]   ;;  %s303_s2 = inlined_call_operand.vmem [shape: f32[1,32], index: 2, kind: input, shape index: {}]   ;;  %s304_s3 = inlined_call_operand.vmem [shape: f32[128,32], index: 3, kind: output, shape index: {}]  }
   0x1   :  { %v39_v0 = vld [vmem:[%s301_s1] sm:$0x3]  ;;  %v16_v2 = vld [vmem:[%s302_s0 + $0x8] sm:$0xff]  ;;  %v17_v14 = vld [vmem:[%s302_s0 + $0x10] sm:$0xff] }
   0x2   :  { %v15_v1 = vld [vmem:[%s302_s0] sm:$0xff]  ;;  %v71_v3 = vsel %vm69_vm0, %v39_v0, 0  ;;  %v20_v6 = vld [vmem:[%s302_s0 + $0x28] sm:$0xff]  ;;  %v18_v15 = vld [vmem:[%s302_s0 + $0x18] sm:$0xff] }
   0x3   :  { %v31_v4 = vpack.c.bf16 %v16_v2, %v15_v1  ;;  %v19_v5 = vld [vmem:[%s302_s0 + $0x20] sm:$0xff]  ;;  %80 = vmatpush.bf16.msra.mxu0 %v71_v3  ;;  %151 = vmatpush.bf16.msra.mxu1 %v71_v3  ;;  %v24_v9 = vld [vmem:[%s302_s0 + $0x48] sm:$0xff]  ;;  %v21_v16 = vld [vmem:[%s302_s0 + $0x30] sm:$0xff]  ;;  %v32_v22 = vpack.c.bf16 %v18_v15, %v17_v14 }
   0x4   :  { %v23_v7 = vld [vmem:[%s302_s0 + $0x40] sm:$0xff]  ;;  %v33_v8 = vpack.c.bf16 %v20_v6, %v19_v5  ;;  %v28_v11 = vld [vmem:[%s302_s0 + $0x68] sm:$0xff]  ;;  %152 = vmatpush.bf16.msra.mxu2 %v71_v3  ;;  %153 = vmatpush.bf16.msra.mxu3 %v71_v3  ;;  %v22_v17 = vld [vmem:[%s302_s0 + $0x38] sm:$0xff] }
   0x5   :  { %v27_v10 = vld [vmem:[%s302_s0 + $0x60] sm:$0xff]  ;;  %v35_v12 = vpack.c.bf16 %v24_v9, %v23_v7  ;;  %v25_v18 = vld [vmem:[%s302_s0 + $0x50] sm:$0xff]  ;;  %v26_v19 = vld [vmem:[%s302_s0 + $0x58] sm:$0xff]  ;;  %v34_v23 = vpack.c.bf16 %v22_v17, %v21_v16 }
   0x6   :  { %v37_v13 = vpack.c.bf16 %v28_v11, %v27_v10  ;;  %143 = vmatmul.msk.bf16.vlgmr.msra.gmra.mxu0 %vm44_vm1, %v31_v4  ;;  %145 = vmatmul.msk.bf16.vlgmr.msra.gmra.mxu1 %vm44_vm1, %v33_v8  ;;  %v29_v20 = vld [vmem:[%s302_s0 + $0x70] sm:$0xff]  ;;  %v30_v21 = vld [vmem:[%s302_s0 + $0x78] sm:$0xff]  ;;  %v36_v24 = vpack.c.bf16 %v26_v19, %v25_v18  ;;  %v154_v26 = vld [vmem:[%s303_s2] ss:$0 sm:$0xff] }
   0x7   :  { %147 = vmatmul.msk.bf16.vlgmr.msra.gmra.mxu2 %vm44_vm1, %v35_v12  ;;  %v38_v25 = vpack.c.bf16 %v30_v21, %v29_v20 }
   0x8   :  { %149 = vmatmul.msk.bf16.vlgmr.msra.gmra.mxu3 %vm44_vm1, %v37_v13 }
  0x16   :  { %144 = vmatmul.msk.bf16.gmra.mxu0 %vm44_vm1, %v32_v22  ;;  %146 = vmatmul.msk.bf16.gmra.mxu1 %vm44_vm1, %v34_v23 }
  0x17   :  { %148 = vmatmul.msk.bf16.gmra.mxu2 %vm44_vm1, %v36_v24 }
  0x18   :  { %150 = vmatmul.msk.bf16.gmra.mxu3 %vm44_vm1, %v38_v25 }
  0x83   :  { %v82_v27 = vpop.f32.mrf.mxu0  ;;  %v92_v28 = vpop.f32.mrf.mxu1 }
  0x84   :  { %v83_v29 = vadd.f32 %v154_v26, %v82_v27  ;;  %v93_v30 = vadd.f32 %v154_v26, %v92_v28 }
  0x86   :  { %123 = vst.msk [vmem:[%s304_s3] sm:$0xff] %vm122_vm2, %v83_v29 }
  0x87   :  { %127 = vst.msk [vmem:[%s304_s3 + $0x20] sm:$0xff] %vm122_vm2, %v93_v30 }
  0x8a   :  { %v102_v31 = vpop.f32.mrf.mxu2 }
  0x8b   :  { %v112_v32 = vpop.f32.mrf.mxu3  ;;  %v103_v33 = vadd.f32 %v154_v26, %v102_v31  ;;  %v84_v35 = vpop.f32.mrf.mxu0 }
  0x8c   :  { %v113_v34 = vadd.f32 %v154_v26, %v112_v32  ;;  %v94_v36 = vpop.f32.mrf.mxu1  ;;  %v85_v37 = vadd.f32 %v154_v26, %v84_v35 }
  0x8d   :  { %v95_v38 = vadd.f32 %v154_v26, %v94_v36  ;;  %131 = vst.msk [vmem:[%s304_s3 + $0x40] sm:$0xff] %vm122_vm2, %v103_v33 }
  0x8e   :  { %135 = vst.msk [vmem:[%s304_s3 + $0x60] sm:$0xff] %vm122_vm2, %v113_v34 }
  0x8f   :  { %124 = vst.msk [vmem:[%s304_s3 + $0x8] sm:$0xff] %vm122_vm2, %v85_v37 }
  0x90   :  { %128 = vst.msk [vmem:[%s304_s3 + $0x28] sm:$0xff] %vm122_vm2, %v95_v38 }
  0x92   :  { %v104_v39 = vpop.f32.mrf.mxu2 }
  0x93   :  { %v114_v40 = vpop.f32.mrf.mxu3  ;;  %v105_v41 = vadd.f32 %v154_v26, %v104_v39  ;;  %v87_v43 = vpop.f32.mrf.mxu0 }
  0x94   :  { %v115_v42 = vadd.f32 %v154_v26, %v114_v40  ;;  %v97_v44 = vpop.f32.mrf.mxu1  ;;  %v88_v45 = vadd.f32 %v154_v26, %v87_v43 }
  0x95   :  { %v98_v46 = vadd.f32 %v154_v26, %v97_v44  ;;  %132 = vst.msk [vmem:[%s304_s3 + $0x48] sm:$0xff] %vm122_vm2, %v105_v41 }
  0x96   :  { %136 = vst.msk [vmem:[%s304_s3 + $0x68] sm:$0xff] %vm122_vm2, %v115_v42 }
  0x97   :  { %125 = vst.msk [vmem:[%s304_s3 + $0x10] sm:$0xff] %vm122_vm2, %v88_v45 }
  0x98   :  { %129 = vst.msk [vmem:[%s304_s3 + $0x30] sm:$0xff] %vm122_vm2, %v98_v46 }
  0x9a   :  { %v107_v47 = vpop.f32.mrf.mxu2 }
  0x9b   :  { %v117_v48 = vpop.f32.mrf.mxu3  ;;  %v108_v49 = vadd.f32 %v154_v26, %v107_v47  ;;  %v89_v51 = vpop.f32.mrf.mxu0 }
  0x9c   :  { %v118_v50 = vadd.f32 %v154_v26, %v117_v48  ;;  %v99_v52 = vpop.f32.mrf.mxu1  ;;  %v90_v53 = vadd.f32 %v154_v26, %v89_v51 }
  0x9d   :  { %v100_v54 = vadd.f32 %v154_v26, %v99_v52  ;;  %133 = vst.msk [vmem:[%s304_s3 + $0x50] sm:$0xff] %vm122_vm2, %v108_v49 }
  0x9e   :  { %137 = vst.msk [vmem:[%s304_s3 + $0x70] sm:$0xff] %vm122_vm2, %v118_v50 }
  0x9f   :  { %126 = vst.msk [vmem:[%s304_s3 + $0x18] sm:$0xff] %vm122_vm2, %v90_v53 }
  0xa0   :  { %130 = vst.msk [vmem:[%s304_s3 + $0x38] sm:$0xff] %vm122_vm2, %v100_v54 }
  0xa2   :  { %v109_v55 = vpop.f32.mrf.mxu2 }
  0xa3   :  { %v119_v56 = vpop.f32.mrf.mxu3  ;;  %v110_v57 = vadd.f32 %v154_v26, %v109_v55 }
  0xa4   :  { %v120_v58 = vadd.f32 %v154_v26, %v119_v56 }
  0xa5   :  { %134 = vst.msk [vmem:[%s304_s3 + $0x58] sm:$0xff] %vm122_vm2, %v110_v57 }
  0xa6   :  { %138 = vst.msk [vmem:[%s304_s3 + $0x78] sm:$0xff] %vm122_vm2, %v120_v58 }

</bundles_post_ra>
